<compile_context>
chip_gen: v7x
topology: tpu7x:2x2x1
jax: 0.10.0
libtpu: 0.0.40
codegen_flags: <defaults>
</compile_context>

<pallas_src>
import functools

import jax
import jax.numpy as jnp
from jax.experimental import pallas as pl
from jax.experimental.pallas import tpu as pltpu

LANE = 128       # lane width of a vreg (last dim)
SUBLANE = 8      # sublane width of a vreg (second-to-last dim)


def _round_up(x, m):
    return (x + m - 1) // m * m


# ----------------------------- fused Pallas kernel --------------------------
def _fused_mlp_kernel(obs_ref, nobs_ref, *refs, num_layers):
    """refs = (w0a, w0b, w1..w_{L-1}, b_packed, o_ref).

    Weights are bf16 and lane-padded to P; biases are f32 packed as (L, P);
    activations accumulate in f32, cast to bf16 only at MXU input boundaries.
    """
    w0a_ref = refs[0]
    w0b_ref = refs[1]
    hidden_w_refs = refs[2:2 + (num_layers - 1)]
    b_ref = refs[2 + (num_layers - 1)]
    o_ref = refs[3 + (num_layers - 1)]

    b = b_ref[...]                                    # (L, P) f32: one packed load

    # Layer 0: concat folded into two dots sharing one f32 accumulator.
    h = jnp.dot(obs_ref[...].astype(jnp.bfloat16), w0a_ref[...],
                preferred_element_type=jnp.float32)
    h = h + jnp.dot(nobs_ref[...].astype(jnp.bfloat16), w0b_ref[...],
                    preferred_element_type=jnp.float32)
    h = jnp.maximum(h + b[0:1, :], 0.0)               # f32 elementwise (v5e-safe)

    # Layers 1..L-1 (ReLU on all but the last). Unrolled at trace time.
    for i, w_ref in enumerate(hidden_w_refs):
        layer = i + 1
        h = jnp.dot(h.astype(jnp.bfloat16), w_ref[...],
                    preferred_element_type=jnp.float32)
        h = h + b[layer:layer + 1, :]
        if layer < num_layers - 1:
            h = jnp.maximum(h, 0.0)

    o_ref[...] = h.astype(o_ref.dtype)                # lane-dense, unmasked store


# ------------------------- parameter preparation ----------------------------
def init_params(key, input_size, given_layers, output_size):
    """Deterministic init matching nn.Linear shapes (uniform +/- 1/sqrt(fan_in)).

    Weights stored transposed: (in_features, out_features); bias (1, out_features).
    """
    sizes = [input_size] + list(given_layers) + [output_size]
    params = []
    for i in range(len(sizes) - 1):
        fan_in, fan_out = sizes[i], sizes[i + 1]
        key, kw, kb = jax.random.split(key, 3)
        bound = 1.0 / float(fan_in) ** 0.5
        w = jax.random.uniform(kw, (fan_in, fan_out), jnp.float32, -bound, bound)
        b = jax.random.uniform(kb, (1, fan_out), jnp.float32, -bound, bound)
        params.append((w, b))
    return params


def prepare_padded_params(params, obs_dim):
    """Split W0 for the folded concat and zero-pad everything to a common
    lane-dense width P (multiple of 128).  Weights are stored in bf16 (native
    MXU dtype on v5e/v6e/v7x); biases stay f32 for the f32 elementwise path.
    Zero padding is exact: padded activation columns stay 0 through ReLU and
    contribute nothing downstream."""
    widths = [w.shape[1] for w, _ in params]
    P = _round_up(max(widths), LANE)
    L = len(params)

    w0, _ = params[0]
    assert w0.shape[0] == 2 * obs_dim, "first layer must take cat(obs, next_obs)"
    d0 = w0.shape[1]
    w0a = jnp.zeros((obs_dim, P), jnp.float32).at[:, :d0].set(w0[:obs_dim])
    w0b = jnp.zeros((obs_dim, P), jnp.float32).at[:, :d0].set(w0[obs_dim:])
    w0a = w0a.astype(jnp.bfloat16)
    w0b = w0b.astype(jnp.bfloat16)

    hidden_ws = []
    for (w, _) in params[1:]:
        wp = jnp.zeros((P, P), jnp.float32).at[:w.shape[0], :w.shape[1]].set(w)
        hidden_ws.append(wp.astype(jnp.bfloat16))

    b_packed = jnp.zeros((L, P), jnp.float32)
    for i, (_, bi) in enumerate(params):
        b_packed = b_packed.at[i, :bi.shape[1]].set(bi[0])

    return w0a, w0b, hidden_ws, b_packed, P


# --------------------------------- forward ----------------------------------
def franka_ffn_inv_forward(obs, next_obs, padded_params, output_size,
                           *, max_tile=2048, two_core_split_threshold=1024):
    """Mirrors FrankaFFNInv.forward: cat(obs, next_obs) -> MLP, fully fused."""
    w0a, w0b, hidden_ws, b_packed, P = padded_params
    L = len(hidden_ws) + 1
    B, obs_dim = obs.shape

    # Batch tiling: TB rows per grid step (multiple of 8), weights resident.
    # For large batches force >= 2 grid steps so v7x's two TensorCores both
    # get work on the "parallel" axis.
    n_steps = pl.cdiv(B, max_tile)
    if B >= two_core_split_threshold:
        n_steps = max(n_steps, 2)
    TB = min(_round_up(pl.cdiv(B, n_steps), SUBLANE), max_tile)
    n_steps = pl.cdiv(B, TB)
    Bp = n_steps * TB
    if Bp != B:
        # Only taken when TB does not divide B (never for the batch=8 demo).
        obs = jnp.zeros((Bp, obs_dim), obs.dtype).at[:B].set(obs)
        next_obs = jnp.zeros((Bp, obs_dim), next_obs.dtype).at[:B].set(next_obs)
    grid = (n_steps,)

    act_spec = pl.BlockSpec((TB, obs_dim), lambda i: (i, 0))
    w_in_spec = pl.BlockSpec((obs_dim, P), lambda i: (0, 0))
    w_hid_spec = pl.BlockSpec((P, P), lambda i: (0, 0))
    b_spec = pl.BlockSpec((L, P), lambda i: (0, 0))
    out_spec = pl.BlockSpec((TB, P), lambda i: (i, 0))

    flops = 2 * Bp * (2 * obs_dim * P + (L - 1) * P * P)
    bytes_accessed = (4 * 2 * Bp * obs_dim                       # f32 inputs
                      + 2 * (2 * obs_dim * P + (L - 1) * P * P)  # bf16 weights
                      + 4 * L * P                                # f32 biases
                      + 4 * Bp * P)                              # f32 output

    kern = functools.partial(_fused_mlp_kernel, num_layers=L)
    out_padded = pl.pallas_call(
        kern,
        out_shape=jax.ShapeDtypeStruct((Bp, P), jnp.float32),
        grid=grid,
        in_specs=[act_spec, act_spec, w_in_spec, w_in_spec]
                 + [w_hid_spec] * (L - 1) + [b_spec],
        out_specs=out_spec,
        compiler_params=pltpu.CompilerParams(
            dimension_semantics=("parallel",)),
        cost_estimate=pl.CostEstimate(
            flops=flops, transcendentals=0, bytes_accessed=bytes_accessed),
    )(obs, next_obs, w0a, w0b, *hidden_ws, b_packed)

    # TODO(synk): downstream consumers (loss, diffToAct) should read the padded
    # (Bp, P) buffer directly and fuse this slice to avoid an extra HBM pass;
    # the eager slice is kept here only to return the nn.Module's output shape.
    return out_padded[:B, :output_size]


# --------------------------------- reference ---------------------------------
def _reference_forward(obs, next_obs, params):
    h = jnp.concatenate([obs, next_obs], axis=1)
    n = len(params)
    for i, (w, b) in enumerate(params):
        h = h @ w + b
        if i < n - 1:
            h = jnp.maximum(h, 0.0)
    return h


# ----------------------------------- main ------------------------------------
if __name__ == "__main__":
    key = jax.random.PRNGKey(0)

    batch = 8
    obs_dim = 12                 # obs and next_obs each (batch, 12)
    input_size = 2 * obs_dim
    given_layers = [32, 32]
    output_size = 7              # Franka 7-DoF action

    k_obs, k_next, k_params = jax.random.split(key, 3)
    obs = jax.random.normal(k_obs, (batch, obs_dim), jnp.float32)
    next_obs = jax.random.normal(k_next, (batch, obs_dim), jnp.float32)

    params = init_params(k_params, input_size, given_layers, output_size)
    padded = prepare_padded_params(params, obs_dim)

    out = franka_ffn_inv_forward(obs, next_obs, padded, output_size)
    out = jax.block_until_ready(out)

    ref = _reference_forward(obs, next_obs, params)
    assert out.shape == (batch, output_size)
    # bf16 MXU operands (deliberate): tolerance loosened vs f32 reference.
    assert jnp.allclose(out, ref, atol=2e-2, rtol=2e-2), \
        float(jnp.max(jnp.abs(out - ref)))

    # TODO(synk): training/optimizer/dataloader/wandb parts of the module are
    # host-side orchestration and are intentionally not ported to Pallas.
    print("KERNEL_OK")
</pallas_src>

<mosaic_0001>
module attributes {stable_mosaic.version = 11 : i64} {
  func.func @_fused_mlp_kernel(%arg0: i32, %arg1: memref<8x12xf32, #tpu.memory_space<vmem>>, %arg2: memref<8x12xf32, #tpu.memory_space<vmem>>, %arg3: memref<12x128xbf16, #tpu.memory_space<vmem>>, %arg4: memref<12x128xbf16, #tpu.memory_space<vmem>>, %arg5: memref<128x128xbf16, #tpu.memory_space<vmem>>, %arg6: memref<128x128xbf16, #tpu.memory_space<vmem>>, %arg7: memref<3x128xf32, #tpu.memory_space<vmem>>, %arg8: memref<8x128xf32, #tpu.memory_space<vmem>>) attributes {dimension_semantics = [#tpu.dimension_semantics<parallel>], iteration_bounds = array<i64: 1>, scalar_prefetch = 0 : i64, scratch_operands = 0 : i64, tpu.core_type = #tpu.core_type<tc>, window_params = [{transform_indices = @transform_0, window_bounds = array<i64: 8, 12>}, {transform_indices = @transform_1, window_bounds = array<i64: 8, 12>}, {pipeline_mode = #tpu.pipeline_mode<synchronous>, transform_indices = @transform_2, window_bounds = array<i64: 12, 128>}, {pipeline_mode = #tpu.pipeline_mode<synchronous>, transform_indices = @transform_3, window_bounds = array<i64: 12, 128>}, {pipeline_mode = #tpu.pipeline_mode<synchronous>, transform_indices = @transform_4, window_bounds = array<i64: 128, 128>}, {pipeline_mode = #tpu.pipeline_mode<synchronous>, transform_indices = @transform_5, window_bounds = array<i64: 128, 128>}, {pipeline_mode = #tpu.pipeline_mode<synchronous>, transform_indices = @transform_6, window_bounds = array<i64: 3, 128>}, {transform_indices = @transform_7, window_bounds = array<i64: 8, 128>}]} {
    %c0 = arith.constant 0 : index
    %c0_0 = arith.constant 0 : index
    %0 = vector.load %arg7[%c0, %c0_0] : memref<3x128xf32, #tpu.memory_space<vmem>>, vector<3x128xf32>
    %c0_1 = arith.constant 0 : index
    %c0_2 = arith.constant 0 : index
    %1 = vector.load %arg1[%c0_1, %c0_2] : memref<8x12xf32, #tpu.memory_space<vmem>>, vector<8x12xf32>
    %2 = arith.truncf %1 : vector<8x12xf32> to vector<8x12xbf16>
    %c0_3 = arith.constant 0 : index
    %c0_4 = arith.constant 0 : index
    %3 = vector.load %arg3[%c0_3, %c0_4] : memref<12x128xbf16, #tpu.memory_space<vmem>>, vector<12x128xbf16>
    %cst = arith.constant dense<0.000000e+00> : vector<8x128xf32>
    %4 = tpu.matmul %2, %3, %cst {dimension_numbers = #tpu.dot_dimension_numbers<[1], [0], [0], [1], [0, 0, 1, 1], [], []>} : vector<8x12xbf16>, vector<12x128xbf16>, vector<8x128xf32> -> vector<8x128xf32>
    %c0_5 = arith.constant 0 : index
    %c0_6 = arith.constant 0 : index
    %5 = vector.load %arg2[%c0_5, %c0_6] : memref<8x12xf32, #tpu.memory_space<vmem>>, vector<8x12xf32>
    %6 = arith.truncf %5 : vector<8x12xf32> to vector<8x12xbf16>
    %c0_7 = arith.constant 0 : index
    %c0_8 = arith.constant 0 : index
    %7 = vector.load %arg4[%c0_7, %c0_8] : memref<12x128xbf16, #tpu.memory_space<vmem>>, vector<12x128xbf16>
    %cst_9 = arith.constant dense<0.000000e+00> : vector<8x128xf32>
    %8 = tpu.matmul %6, %7, %cst_9 {dimension_numbers = #tpu.dot_dimension_numbers<[1], [0], [0], [1], [0, 0, 1, 1], [], []>} : vector<8x12xbf16>, vector<12x128xbf16>, vector<8x128xf32> -> vector<8x128xf32>
    %9 = arith.addf %4, %8 : vector<8x128xf32>
    %10 = vector.extract_strided_slice %0 {offsets = [0, 0], sizes = [1, 128], strides = [1, 1]} : vector<3x128xf32> to vector<1x128xf32>
    %11 = vector.broadcast %10 : vector<1x128xf32> to vector<8x128xf32>
    %12 = arith.addf %9, %11 : vector<8x128xf32>
    %cst_10 = arith.constant 0.000000e+00 : f32
    %13 = vector.broadcast %cst_10 : f32 to vector<8x128xf32>
    %14 = arith.maximumf %12, %13 : vector<8x128xf32>
    %15 = arith.truncf %14 : vector<8x128xf32> to vector<8x128xbf16>
    %c0_11 = arith.constant 0 : index
    %c0_12 = arith.constant 0 : index
    %16 = vector.load %arg5[%c0_11, %c0_12] : memref<128x128xbf16, #tpu.memory_space<vmem>>, vector<128x128xbf16>
    %cst_13 = arith.constant dense<0.000000e+00> : vector<8x128xf32>
    %17 = tpu.matmul %15, %16, %cst_13 {dimension_numbers = #tpu.dot_dimension_numbers<[1], [0], [0], [1], [0, 0, 1, 1], [], []>} : vector<8x128xbf16>, vector<128x128xbf16>, vector<8x128xf32> -> vector<8x128xf32>
    %18 = vector.extract_strided_slice %0 {offsets = [1, 0], sizes = [1, 128], strides = [1, 1]} : vector<3x128xf32> to vector<1x128xf32>
    %19 = vector.broadcast %18 : vector<1x128xf32> to vector<8x128xf32>
    %20 = arith.addf %17, %19 : vector<8x128xf32>
    %cst_14 = arith.constant 0.000000e+00 : f32
    %21 = vector.broadcast %cst_14 : f32 to vector<8x128xf32>
    %22 = arith.maximumf %20, %21 : vector<8x128xf32>
    %23 = arith.truncf %22 : vector<8x128xf32> to vector<8x128xbf16>
    %c0_15 = arith.constant 0 : index
    %c0_16 = arith.constant 0 : index
    %24 = vector.load %arg6[%c0_15, %c0_16] : memref<128x128xbf16, #tpu.memory_space<vmem>>, vector<128x128xbf16>
    %cst_17 = arith.constant dense<0.000000e+00> : vector<8x128xf32>
    %25 = tpu.matmul %23, %24, %cst_17 {dimension_numbers = #tpu.dot_dimension_numbers<[1], [0], [0], [1], [0, 0, 1, 1], [], []>} : vector<8x128xbf16>, vector<128x128xbf16>, vector<8x128xf32> -> vector<8x128xf32>
    %26 = vector.extract_strided_slice %0 {offsets = [2, 0], sizes = [1, 128], strides = [1, 1]} : vector<3x128xf32> to vector<1x128xf32>
    %27 = vector.broadcast %26 : vector<1x128xf32> to vector<8x128xf32>
    %28 = arith.addf %25, %27 : vector<8x128xf32>
    %c0_18 = arith.constant 0 : index
    %c0_19 = arith.constant 0 : index
    %29 = vector.load %arg8[%c0_18, %c0_19] : memref<8x128xf32, #tpu.memory_space<vmem>>, vector<8x128xf32>
    tpu.vector_store %arg8[%c0_18, %c0_19], %28 {strides = array<i32>} : memref<8x128xf32, #tpu.memory_space<vmem>>, vector<8x128xf32>,
    return
  }
  func.func @transform_0(%arg0: i32) -> (i32, i32) {
    %c0_i32 = arith.constant 0 : i32
    %c0_i32_0 = arith.constant 0 : i32
    return %arg0, %c0_i32 : i32, i32
  }
  func.func @transform_1(%arg0: i32) -> (i32, i32) {
    %c0_i32 = arith.constant 0 : i32
    %c0_i32_0 = arith.constant 0 : i32
    return %arg0, %c0_i32 : i32, i32
  }
  func.func @transform_2(%arg0: i32) -> (i32, i32) {
    %c0_i32 = arith.constant 0 : i32
    %c0_i32_0 = arith.constant 0 : i32
    %c0_i32_1 = arith.constant 0 : i32
    return %c0_i32, %c0_i32_0 : i32, i32
  }
  func.func @transform_3(%arg0: i32) -> (i32, i32) {
    %c0_i32 = arith.constant 0 : i32
    %c0_i32_0 = arith.constant 0 : i32
    %c0_i32_1 = arith.constant 0 : i32
    return %c0_i32, %c0_i32_0 : i32, i32
  }
  func.func @transform_4(%arg0: i32) -> (i32, i32) {
    %c0_i32 = arith.constant 0 : i32
    %c0_i32_0 = arith.constant 0 : i32
    %c0_i32_1 = arith.constant 0 : i32
    return %c0_i32, %c0_i32_0 : i32, i32
  }
  func.func @transform_5(%arg0: i32) -> (i32, i32) {
    %c0_i32 = arith.constant 0 : i32
    %c0_i32_0 = arith.constant 0 : i32
    %c0_i32_1 = arith.constant 0 : i32
    return %c0_i32, %c0_i32_0 : i32, i32
  }
  func.func @transform_6(%arg0: i32) -> (i32, i32) {
    %c0_i32 = arith.constant 0 : i32
    %c0_i32_0 = arith.constant 0 : i32
    %c0_i32_1 = arith.constant 0 : i32
    return %c0_i32, %c0_i32_0 : i32, i32
  }
  func.func @transform_7(%arg0: i32) -> (i32, i32) {
    %c0_i32 = arith.constant 0 : i32
    %c0_i32_0 = arith.constant 0 : i32
    return %arg0, %c0_i32 : i32, i32
  }
}

</mosaic_0001>

<bundles_post_ra>
// kernel: tpu_custom_call.1
= control target key start
LH: loop header
LB: loop body
LE: loop exit
PB: predicated region body
PF: predicated region fallthrough
CT: control target
= control target key end

     0   :  { %12 = vsyncpa [#allocation3], 0  ;;  %s873_s0 = inlined_call_operand.hbm [shape: f32[8,12], index: 0, kind: input, shape index: {}]   ;;  %s874_s1 = inlined_call_operand.hbm [shape: f32[8,12], index: 1, kind: input, shape index: {}]   ;;  %s875_s2 = inlined_call_operand.hbm [shape: bf16[12,128], index: 2, kind: input, shape index: {}]   ;;  %s876_s3 = inlined_call_operand.vmem [shape: bf16[12,128], index: 3, kind: input, shape index: {}]   ;;  %s877_s4 = inlined_call_operand.hbm [shape: bf16[128,128], index: 4, kind: input, shape index: {}]   ;;  %s878_s5 = inlined_call_operand.hbm [shape: bf16[128,128], index: 5, kind: input, shape index: {}]   ;;  %s879_s6 = inlined_call_operand.vmem [shape: f32[3,128], index: 6, kind: input, shape index: {}]   ;;  %s880_s7 = inlined_call_operand.hbm [shape: f32[8,128], index: 7, kind: output, shape index: {}]  }
   0x1   :  { %13 = vsyncpa [#allocation6], 0 }
   0x2   :  { %14 = vsyncpa [#allocation9], 0 }
   0x3   :  { %15 = vsyncpa [#allocation4], 0  ;;  %s710_s24 = smov [#allocation5]   ;;  %s570_s28 = scalar_lea.hbm %s874_s1, 128 }
   0x4   :  { %s32_s25 = sshll.u32 %s710_s24, 4  ;;  %p571_p0 = scmp.ne.s32.totalorder %s874_s1, %s570_s28  ;;  %s33_s25 = int_to_ptr.vmem [resolvable:$true] %s32_s25 }
   0x5   :  { %p574_p1 = scmp.lt.u32.totalorder %s570_s28, %s874_s1 }
   0x7   :  { %p576_p2 = pnand %p574_p1, %p571_p0 }
   0x9   :  { %579 = shalt.err (!%p576_p2)
}
   0xa   :  { %s580_s10 = scalar_lea.vmem %s33_s25, 128  ;;  %p585_p4 = scmp.lt.s32.totalorder %s33_s25, %s33_s25 }
   0xb   :  { %p581_p3 = scmp.ne.s32.totalorder %s33_s25, %s580_s10  ;;  %p586_p5 = scmp.lt.s32.totalorder %s580_s10, %s580_s10 }
   0xd   :  { %p587_p6 = por %p586_p5, %p585_p4 }
   0xf   :  { %p588_p7 = pnand %p587_p6, %p581_p3 }
  0x11   :  { %591 = shalt.err (!%p588_p7)
}
  0x12   :  { %35 = dma.hbm_to_vmem [thread:$0]  %s874_s1, 128, %s33_s25, [#allocation6]  }
  0x13   :  { %s711_s13 = smov [#allocation8]   ;;  %s712_s15 = smov [#allocation2]  }
  0x14   :  { %s55_s14 = sshll.u32 %s711_s13, 4  ;;  %s22_s16 = sshll.u32 %s712_s15, 4  ;;  %s56_s14 = int_to_ptr.vmem [resolvable:$true] %s55_s14  ;;  %s23_s16 = int_to_ptr.vmem [resolvable:$true] %s22_s16 }
  0x15   :  { %s592_s19 = scalar_lea.hbm %s877_s4, 1024 }
  0x16   :  { %p593_p8 = scmp.ne.s32.totalorder %s877_s4, %s592_s19  ;;  %p596_p9 = scmp.lt.u32.totalorder %s592_s19, %s877_s4 }
  0x18   :  { %p598_p10 = pnand %p596_p9, %p593_p8 }
  0x1a   :  { %601 = shalt.err (!%p598_p10)
}
  0x1b   :  { %s602_s1 = scalar_lea.vmem %s56_s14, 1024  ;;  %p607_p12 = scmp.lt.s32.totalorder %s56_s14, %s56_s14 }
  0x1c   :  { %p603_p11 = scmp.ne.s32.totalorder %s56_s14, %s602_s1  ;;  %p608_p13 = scmp.lt.s32.totalorder %s602_s1, %s602_s1 }
  0x1e   :  { %p609_p0 = por %p608_p13, %p607_p12 }
  0x20   :  { %p610_p1 = pnand %p609_p0, %p603_p11 }
  0x22   :  { %613 = shalt.err (!%p610_p1)
}
  0x23   :  { %s713_s24 = smov 64   ;;  %s714_s25 = smov 4  }
  0x24   :  { %61 = dma.hbm_to_vmem [thread:$0]  %s877_s4, 1024, %s56_s14, [#allocation9], %s713_s24, %s713_s24, %s714_s25  }
  0x25   :  { %s614_s30 = scalar_lea.hbm %s873_s0, 128 }
  0x26   :  { %p615_p2 = scmp.ne.s32.totalorder %s873_s0, %s614_s30  ;;  %p618_p3 = scmp.lt.u32.totalorder %s614_s30, %s873_s0 }
  0x28   :  { %p620_p4 = pnand %p618_p3, %p615_p2 }
  0x2a   :  { %623 = shalt.err (!%p620_p4)
}
  0x2b   :  { %s624_s12 = scalar_lea.vmem %s23_s16, 128  ;;  %p629_p6 = scmp.lt.s32.totalorder %s23_s16, %s23_s16 }
  0x2c   :  { %p625_p5 = scmp.ne.s32.totalorder %s23_s16, %s624_s12  ;;  %p630_p7 = scmp.lt.s32.totalorder %s624_s12, %s624_s12 }
  0x2e   :  { %p631_p8 = por %p630_p7, %p629_p6 }
  0x30   :  { %p632_p9 = pnand %p631_p8, %p625_p5 }
  0x32   :  { %635 = shalt.err (!%p632_p9)
}
  0x33   :  { %25 = dma.hbm_to_vmem [thread:$0]  %s873_s0, 128, %s23_s16, [#allocation3]  }
  0x34   :  { %s715_s14 = smov [#allocation7]   ;;  %s716_s17 = smov [#allocation10]  }
  0x35   :  { %s41_s15 = sshll.u32 %s715_s14, 4  ;;  %s67_s18 = sshll.u32 %s716_s17, 4  ;;  %s42_s15 = int_to_ptr.vmem [resolvable:$true] %s41_s15  ;;  %s68_s18 = int_to_ptr.vmem [resolvable:$true] %s67_s18 }
  0x36   :  { %s636_s21 = scalar_lea.hbm %s875_s2, 128 }
  0x37   :  { %p637_p10 = scmp.ne.s32.totalorder %s875_s2, %s636_s21  ;;  %p640_p11 = scmp.lt.u32.totalorder %s636_s21, %s875_s2 }
  0x39   :  { %p642_p12 = pnand %p640_p11, %p637_p10 }
  0x3b   :  { %645 = shalt.err (!%p642_p12)
}
  0x3c   :  { %s646_s0 = scalar_lea.vmem %s42_s15, 128  ;;  %p651_p0 = scmp.lt.s32.totalorder %s42_s15, %s42_s15 }
  0x3d   :  { %p647_p13 = scmp.ne.s32.totalorder %s42_s15, %s646_s0  ;;  %p652_p1 = scmp.lt.s32.totalorder %s646_s0, %s646_s0 }
  0x3f   :  { %p653_p2 = por %p652_p1, %p651_p0 }
  0x41   :  { %p654_p3 = pnand %p653_p2, %p647_p13 }
  0x43   :  { %657 = shalt.err (!%p654_p3)
}
  0x44   :  { %47 = dma.hbm_to_vmem [thread:$0]  %s875_s2, 128, %s42_s15, [#allocation6], %s713_s24, %s713_s24, %s714_s25  }
  0x45   :  { %s658_s30 = scalar_lea.hbm %s878_s5, 1024 }
  0x46   :  { %p659_p4 = scmp.ne.s32.totalorder %s878_s5, %s658_s30  ;;  %p662_p5 = scmp.lt.u32.totalorder %s658_s30, %s878_s5 }
  0x48   :  { %p664_p6 = pnand %p662_p5, %p659_p4 }
  0x4a   :  { %667 = shalt.err (!%p664_p6)
}
  0x4b   :  { %s668_s12 = scalar_lea.vmem %s68_s18, 1024  ;;  %p673_p8 = scmp.lt.s32.totalorder %s68_s18, %s68_s18 }
  0x4c   :  { %p669_p7 = scmp.ne.s32.totalorder %s68_s18, %s668_s12  ;;  %p674_p9 = scmp.lt.s32.totalorder %s668_s12, %s668_s12 }
  0x4e   :  { %p675_p10 = por %p674_p9, %p673_p8 }
  0x50   :  { %p676_p11 = pnand %p675_p10, %p669_p7 }
  0x52   :  { %679 = shalt.err (!%p676_p11)
}
  0x53   :  { %73 = dma.hbm_to_vmem [thread:$0]  %s878_s5, 1024, %s68_s18, [#allocation9], %s713_s24, %s713_s24, %s714_s25  }
  0x54   :  { %702 = dma.done.wait [#allocation3], 128  }
  0x55   :  { %703 = vsyncadd [#allocation3], 4294967168 }
  0x56   :  { %704 = dma.done.wait [#allocation6], 256  }
  0x57   :  { %705 = vsyncadd [#allocation6], 4294967040 }
  0x58   :  { %706 = dma.done.wait [#allocation9], 2048  }
  0x59   :  { %707 = vsyncadd [#allocation9], 4294965248  ;;  %v717_v0 = vmov 0.0   ;;  %vm718_vm0 = vmmov 0   ;;  %vm110_vm1 = vcmask 1045504   ;;  %v97_v4 = vld [vmem:[#allocation5] sm:$0xff]  ;;  %v205_v23 = vlaneseq }
  0x5a   :  { %490 = vmatprep.subr.bf16.mxu0 %v717_v0  ;;  %496 = vmatprep.subr.bf16.mxu1 %v717_v0  ;;  %v552_v1 = vld [vmem:[%s876_s3] sm:$0x3f]   ;;  %v553_v2 = vld [vmem:[#allocation7] sm:$0x3f]   ;;  %vm106_vm2 = vcmask 97280   ;;  %v98_v7 = vpack.c.bf16 %v97_v4, %v97_v4  ;;  %v554_v9 = vld [vmem:[#allocation8] sm:$0xff]  }
  0x5b   :  { %492 = vmatprep.mubr.msk.bf16.mxu0 %vm718_vm0, %v717_v0  ;;  %498 = vmatprep.mubr.msk.bf16.mxu1 %vm718_vm0, %v717_v0  ;;  %v112_v3 = vsel %vm110_vm1, %v552_v1, 0  ;;  %v93_v5 = vld [vmem:[#allocation2] sm:$0xff]  ;;  %v163_v6 = vsel %vm110_vm1, %v553_v2, 0  ;;  %v556_v11 = vld [vmem:[#allocation8 + $0x10] sm:$0xff]   ;;  %v557_v12 = vld [vmem:[#allocation8 + $0x18] sm:$0xff]   ;;  %v206_v24 = vshrl.u32 %v205_v23, 7 }
  0x5c   :  { %491 = vmatpush3.bf16.msra.mxu0 %v112_v3  ;;  %v94_v8 = vpack.c.bf16 %v93_v5, %v93_v5  ;;  %497 = vmatpush3.bf16.msra.mxu1 %v163_v6  ;;  %v555_v10 = vld [vmem:[#allocation8 + $0x8] sm:$0xff]   ;;  %v558_v13 = vld [vmem:[#allocation8 + $0x20] sm:$0xff]   ;;  %v560_v15 = vld [vmem:[#allocation8 + $0x30] sm:$0xff]  }
  0x5d   :  { %502 = vmatprep.subr.bf16.mxu0 %v717_v0  ;;  %522 = vmatprep.subr.bf16.mxu1 %v717_v0  ;;  %v559_v14 = vld [vmem:[#allocation8 + $0x28] sm:$0xff]   ;;  %v561_v16 = vld [vmem:[#allocation8 + $0x38] sm:$0xff]   ;;  %v562_v17 = vld [vmem:[#allocation10] sm:$0xff]   ;;  %v207_v25 = vsub.s32 0, %v206_v24  ;;  %v230_v42 = vsub.s32 1, %v206_v24  ;;  %v340_v51 = vsub.s32 2, %v206_v24 }
  0x5e   :  { %v563_v18 = vld [vmem:[#allocation10 + $0x8] sm:$0xff]   ;;  %v564_v19 = vld [vmem:[#allocation10 + $0x10] sm:$0xff]   ;;  %v565_v20 = vld [vmem:[#allocation10 + $0x18] sm:$0xff]  }
  0x5f   :  { %493 = vmatmul.mubr.msk.bf16.vlgmr.msra.gmra.mrb[0].mxu0 %vm106_vm2, %v98_v7  ;;  %499 = vmatmul.mubr.msk.bf16.vlgmr.msra.gmra.mrb[0].mxu1 %vm106_vm2, %v94_v8  ;;  %v566_v21 = vld [vmem:[#allocation10 + $0x20] sm:$0xff]   ;;  %v567_v22 = vld [vmem:[#allocation10 + $0x28] sm:$0xff]   ;;  %v568_v40 = vld [vmem:[#allocation10 + $0x30] sm:$0xff]  }
  0x60   :  { %503 = vmatpush3.bf16.msra.mxu0 %v554_v9  ;;  %518 = vmatprep.mubr.msk.bf16.mxu0 %vm718_vm0, %v717_v0  ;;  %v92_v26 = vld [vmem:[%s879_s6] sm:$0x7]  ;;  %v569_v41 = vld [vmem:[#allocation10 + $0x38] sm:$0xff]   ;;  %s719_s6 = smov [#allocation11]  }
  0x61   :  { %504 = vmatprep.subr.bf16.mxu0 %v717_v0  ;;  %538 = vmatprep.mubr.msk.bf16.mxu1 %vm718_vm0, %v717_v0  ;;  %v208_v28 = vrot.slane %v92_v26, %v207_v25  ;;  %v231_v43 = vrot.slane %v92_v26, %v230_v42  ;;  %v341_v52 = vrot.slane %v92_v26, %v340_v51  ;;  %s437_s13 = sshll.u32 %s719_s6, 4  ;;  %s438_s13 = int_to_ptr.vmem [resolvable:$true] %s437_s13 }
  0x62   :  { %523 = vmatpush3.bf16.msra.mxu1 %v562_v17  ;;  %s680_s14 = scalar_lea.vmem %s438_s13, 128  ;;  %p685_p13 = scmp.lt.s32.totalorder %s438_s13, %s438_s13 }
  0x63   :  { %524 = vmatprep.subr.bf16.mxu1 %v717_v0  ;;  %p681_p12 = scmp.ne.s32.totalorder %s438_s13, %s680_s14  ;;  %p686_p0 = scmp.lt.s32.totalorder %s680_s14, %s680_s14 }
  0x64   :  { %505 = vmatpush3.bf16.msra.mxu0 %v555_v10 }
  0x65   :  { %506 = vmatprep.subr.bf16.mxu0 %v717_v0  ;;  %p687_p1 = por %p686_p0, %p685_p13 }
  0x66   :  { %525 = vmatpush3.bf16.msra.mxu1 %v563_v18 }
  0x67   :  { %526 = vmatprep.subr.bf16.mxu1 %v717_v0  ;;  %p688_p2 = pnand %p687_p1, %p681_p12 }
  0x68   :  { %507 = vmatpush3.bf16.msra.mxu0 %v556_v11 }
  0x69   :  { %508 = vmatprep.subr.bf16.mxu0 %v717_v0 }
  0x6a   :  { %527 = vmatpush3.bf16.msra.mxu1 %v564_v19 }
  0x6b   :  { %528 = vmatprep.subr.bf16.mxu1 %v717_v0 }
  0x6c   :  { %509 = vmatpush3.bf16.msra.mxu0 %v557_v12 }
  0x6d   :  { %510 = vmatprep.subr.bf16.mxu0 %v717_v0 }
  0x6e   :  { %529 = vmatpush3.bf16.msra.mxu1 %v565_v20 }
  0x6f   :  { %530 = vmatprep.subr.bf16.mxu1 %v717_v0 }
  0x70   :  { %511 = vmatpush3.bf16.msra.mxu0 %v558_v13 }
  0x71   :  { %512 = vmatprep.subr.bf16.mxu0 %v717_v0 }
  0x72   :  { %531 = vmatpush3.bf16.msra.mxu1 %v566_v21 }
  0x73   :  { %532 = vmatprep.subr.bf16.mxu1 %v717_v0 }
  0x74   :  { %513 = vmatpush3.bf16.msra.mxu0 %v559_v14 }
  0x75   :  { %514 = vmatprep.subr.bf16.mxu0 %v717_v0 }
  0x76   :  { %533 = vmatpush3.bf16.msra.mxu1 %v567_v22 }
  0x77   :  { %534 = vmatprep.subr.bf16.mxu1 %v717_v0 }
  0x78   :  { %515 = vmatpush3.bf16.msra.mxu0 %v560_v15 }
  0x79   :  { %516 = vmatprep.subr.bf16.mxu0 %v717_v0 }
  0x7a   :  { %535 = vmatpush3.bf16.msra.mxu1 %v568_v40 }
  0x7b   :  { %536 = vmatprep.subr.bf16.mxu1 %v717_v0 }
  0x7c   :  { %517 = vmatpush3.bf16.msra.mxu0 %v561_v16 }
  0x7e   :  { %537 = vmatpush3.bf16.msra.mxu1 %v569_v41 }
 0x132   :  { %v148_v27 = vpop.f32.mrb[0].mxu0  ;;  %v199_v29 = vpop.f32.mrb[0].mxu1 }
 0x133   :  { %v494_v30 = vpop.f32.mrb[1].mxu0  ;;  %v200_v31 = vadd.f32 %v199_v29, %v148_v27  ;;  %v500_v32 = vpop.f32.mrb[1].mxu1 }
 0x134   :  { %v151_v33 = vpop.f32.mrb[2].mxu0  ;;  %v202_v34 = vpop.f32.mrb[2].mxu1 }
 0x135   :  { %v495_v35 = vpop.f32.mrb[3].mxu0  ;;  %v209_v36 = vadd.f32 %v208_v28, %v200_v31  ;;  %v501_v37 = vpop.f32.mrb[3].mxu1 }
 0x137   :  { %v210_v38 = vmax.f32 %v209_v36, 0.0 }
 0x139   :  { %v211_v39 = vpack.c.bf16 %v210_v38, %v210_v38 }
 0x13b   :  { %519 = vmatmul.mubr.bf16.vlgmr.msra.gmra.mrb[4].mxu0 %v211_v39 }
 0x20e   :  { %v314_v44 = vpop.f32.mrb[4].mxu0 }
 0x20f   :  { %v315_v45 = vadd.f32 %v314_v44, %v231_v43  ;;  %v520_v46 = vpop.f32.mrb[5].mxu0 }
 0x210   :  { %v317_v47 = vpop.f32.mrb[6].mxu0 }
 0x211   :  { %v320_v48 = vmax.f32 %v315_v45, 0.0  ;;  %v521_v49 = vpop.f32.mrb[7].mxu0 }
 0x213   :  { %v321_v50 = vpack.c.bf16 %v320_v48, %v320_v48 }
 0x215   :  { %539 = vmatmul.mubr.bf16.vlgmr.msra.gmra.mrb[4].mxu1 %v321_v50 }
 0x2e8   :  { %v424_v53 = vpop.f32.mrb[4].mxu1 }
 0x2e9   :  { %v425_v54 = vadd.f32 %v424_v53, %v341_v52  ;;  %v540_v55 = vpop.f32.mrb[5].mxu1 }
 0x2ea   :  { %v427_v56 = vpop.f32.mrb[6].mxu1 }
 0x2eb   :  { %430 = vst [vmem:[#allocation11] sm:$0xff] %v425_v54  ;;  %v541_v57 = vpop.f32.mrb[7].mxu1 }
 0x2ec   :  { %691 = shalt.err (!%p688_p2)
}
 0x2ed   :  { %s692_s18 = scalar_lea.hbm %s880_s7, 128 }
 0x2ee   :  { %p693_p3 = scmp.ne.s32.totalorder %s880_s7, %s692_s18  ;;  %p696_p4 = scmp.lt.u32.totalorder %s692_s18, %s880_s7 }
 0x2f0   :  { %p698_p5 = pnand %p696_p4, %p693_p3 }
 0x2f2   :  { %701 = shalt.err (!%p698_p5)
}
 0x2f3   :  { %440 = dma.vmem_to_hbm [thread:$0]  %s438_s13, 128, %s880_s7, [#allocation4]  }
 0x2f4   :  { %708 = dma.done.wait [#allocation4], 128  }
 0x2f5   :  { %709 = vsyncadd [#allocation4], 4294967168 }
 0x2f6   :  { %444 = vsyncpa [#allocation3], 1 }
 0x2f7   :  { %445 = vsyncpa [#allocation6], 1 }
 0x2f8   :  { %446 = vsyncpa [#allocation9], 1 }
 0x2f9   :  { %447 = vsyncpa [#allocation4], 1 }

</bundles_post_ra>
